<compile_context>
chip_gen: v6e
topology: v6e:2x2x1
jax: 0.10.0
libtpu: 0.0.40
codegen_flags: <defaults>
</compile_context>

<pallas_src>
import math
import functools

import numpy as np
import jax
import jax.numpy as jnp
from jax.experimental import pallas as pl
from jax.experimental.pallas import tpu as pltpu


def _gaussian_1d(window_size, sigma=1.5):
    # Same construction as pytorch_ssim.gaussian(window_size, 1.5), normalized.
    g = np.array(
        [math.exp(-((x - window_size // 2) ** 2) / (2.0 * sigma ** 2))
         for x in range(window_size)],
        dtype=np.float64,
    )
    return g / g.sum()


def _band_matrix(n, g1d, pad):
    """(n, n) banded matrix B with B[i, j] = g[j - i + pad].

    `B @ x` (and, B being symmetric, `x @ B`) equals the 1-D Gaussian "same"
    convolution with zero padding, i.e. F.conv2d(..., padding=win//2) along
    one axis — the padding is fused into the matrix, no jnp.pad needed.
    """
    win = len(g1d)
    b = np.zeros((n, n), dtype=np.float32)
    for i in range(n):
        for j in range(n):
            k = j - i + pad
            if 0 <= k < win:
                b[i, j] = g1d[k]
    return b


def _ssim_kernel(x_ref, y_ref, bh_ref, bw_ref, o_ref, acc_ref, *, inv_n):
    """Per-grid-step: one (H, W) image pair.

    x_ref / y_ref : (1, H, W) VMEM blocks (native dtype, cast to f32 here)
    bh_ref        : (H, H) banded Gaussian matrix (rows / sublane direction)
    bw_ref        : (W, W) banded Gaussian matrix (cols / lane direction)
    o_ref         : (1,)  SMEM output — final loss written on the last step
    acc_ref       : (1,)  SMEM scratch — running sum of the SSIM map
    """
    i = pl.program_id(0)
    n = pl.num_programs(0)

    @pl.when(i == 0)
    def _():
        acc_ref[0] = jnp.float32(0.0)

    x = x_ref[0].astype(jnp.float32)   # (H, W)
    y = y_ref[0].astype(jnp.float32)   # (H, W)
    bh = bh_ref[...]                   # (H, H)
    bw = bw_ref[...]                   # (W, W)

    # Stack the 5 conv inputs along a batch axis so each conv direction is a
    # single batched MXU matmul instead of 5x11 shifted VPU/XLU FMAs.
    t = jnp.stack([x, y, x * x, y * y, x * y], axis=0)        # (5, H, W)
    bw_b = jnp.broadcast_to(bw, (5,) + bw.shape)              # (5, W, W)
    bh_b = jnp.broadcast_to(bh, (5,) + bh.shape)              # (5, H, H)

    # W-direction (lane) Gaussian conv:  out[s,h,v] = sum_w t[s,h,w] * Bw[w,v]
    tw = jnp.einsum("shw,swv->shv", t, bw_b,
                    preferred_element_type=jnp.float32)       # (5, H, W)
    # H-direction (sublane) Gaussian conv: out[s,i,w] = sum_h Bh[i,h] * tw[s,h,w]
    th = jnp.einsum("sih,shw->siw", bh_b, tw,
                    preferred_element_type=jnp.float32)       # (5, H, W)

    mu1, mu2, ex2, ey2, exy = th[0], th[1], th[2], th[3], th[4]

    mu1_sq = mu1 * mu1
    mu2_sq = mu2 * mu2
    mu1_mu2 = mu1 * mu2
    sigma1_sq = ex2 - mu1_sq
    sigma2_sq = ey2 - mu2_sq
    sigma12 = exy - mu1_mu2

    # NOTE: C1/C2 assume inputs normalized to data range [0, 1] (pytorch_ssim
    # default); density maps with unnormalized counts change the constants.
    c1 = jnp.float32(0.01 ** 2)
    c2 = jnp.float32(0.03 ** 2)
    num = (2.0 * mu1_mu2 + c1) * (2.0 * sigma12 + c2)
    den = (mu1_sq + mu2_sq + c1) * (sigma1_sq + sigma2_sq + c2)
    ssim_map = num * pl.reciprocal(den, approx=True)

    acc_ref[0] = acc_ref[0] + jnp.sum(ssim_map)

    @pl.when(i == n - 1)
    def _():
        # Fused epilogue: loss = 1 - mean(ssim_map over all B*C*H*W elements).
        o_ref[0] = jnp.float32(1.0) - acc_ref[0] * jnp.float32(inv_n)


def ssim_loss(density_pred, density_gt, *, window_size=11, outstride=1, weight=1.0):
    """Forward of SSIMLoss: 1 - SSIM(pred, gt) (size_average=True)."""
    del weight  # stored by the PyTorch module but unused in forward
    pred = jnp.asarray(density_pred)
    gt = jnp.asarray(density_gt)

    if outstride != 1:
        # TODO(synk): `self.resize` is not defined in the reference snippet;
        # approximate it with a count-preserving average-pool downsample.
        cnt_gt = gt.sum()
        b_, c_, hh, ww = gt.shape
        gt = gt.reshape(b_, c_, hh // outstride, outstride,
                        ww // outstride, outstride).mean(axis=(3, 5))
        cnt_cur = gt.sum()
        gt = gt * (cnt_gt / jnp.where(cnt_cur == 0, jnp.ones_like(cnt_cur), cnt_cur))

    B, C, H, W = pred.shape
    pad = window_size // 2
    g1d = _gaussian_1d(window_size)
    band_h = jnp.asarray(_band_matrix(H, g1d, pad))   # (H, H)
    band_w = jnp.asarray(_band_matrix(W, g1d, pad))   # (W, W)

    x = pred.reshape(B * C, H, W)
    y = gt.reshape(B * C, H, W)

    kernel = functools.partial(_ssim_kernel, inv_n=1.0 / float(B * C * H * W))

    loss = pl.pallas_call(
        kernel,
        grid=(B * C,),
        in_specs=[
            pl.BlockSpec((1, H, W), lambda i: (i, 0, 0)),   # pred image i
            pl.BlockSpec((1, H, W), lambda i: (i, 0, 0)),   # gt image i
            pl.BlockSpec((H, H), lambda i: (0, 0)),          # band_h (resident)
            pl.BlockSpec((W, W), lambda i: (0, 0)),          # band_w (resident)
        ],
        out_specs=pl.BlockSpec((1,), lambda i: (0,),
                               memory_space=pltpu.MemorySpace.SMEM),
        out_shape=jax.ShapeDtypeStruct((1,), jnp.float32),
        scratch_shapes=[pltpu.SMEM((1,), jnp.float32)],
        compiler_params=pltpu.CompilerParams(
            dimension_semantics=("arbitrary",)),
    )(x, y, band_h, band_w)

    return loss[0]


if __name__ == "__main__":
    key = jax.random.PRNGKey(0)
    k1, k2 = jax.random.split(key)
    # Small shapes consistent with density-map inputs: NCHW.
    density_pred = jax.random.uniform(k1, (2, 4, 16, 16), dtype=jnp.float32)
    density_gt = jax.random.uniform(k2, (2, 4, 16, 16), dtype=jnp.float32)

    loss = ssim_loss(density_pred, density_gt,
                     window_size=11, outstride=1, weight=1.0)
    jax.block_until_ready(loss)
    print("KERNEL_OK")
</pallas_src>

<mosaic_0001>
module attributes {stable_mosaic.version = 11 : i64} {
  func.func @_ssim_kernel(%arg0: i32, %arg1: memref<1x16x16xf32, #tpu.memory_space<vmem>>, %arg2: memref<1x16x16xf32, #tpu.memory_space<vmem>>, %arg3: memref<16x16xf32, #tpu.memory_space<vmem>>, %arg4: memref<16x16xf32, #tpu.memory_space<vmem>>, %arg5: memref<1xf32, #tpu.memory_space<smem>>, %arg6: memref<1xf32, #tpu.memory_space<smem>>) attributes {dimension_semantics = [#tpu.dimension_semantics<arbitrary>], iteration_bounds = array<i64: 8>, scalar_prefetch = 0 : i64, scratch_operands = 1 : i64, tpu.core_type = #tpu.core_type<tc>, window_params = [{transform_indices = @transform_0, window_bounds = array<i64: 1, 16, 16>}, {transform_indices = @transform_1, window_bounds = array<i64: 1, 16, 16>}, {pipeline_mode = #tpu.pipeline_mode<synchronous>, transform_indices = @transform_2, window_bounds = array<i64: 16, 16>}, {pipeline_mode = #tpu.pipeline_mode<synchronous>, transform_indices = @transform_3, window_bounds = array<i64: 16, 16>}, {transform_indices = @transform_4, window_bounds = array<i64: 1>}]} {
    %c0_i32 = arith.constant 0 : i32
    %0 = arith.cmpi eq, %arg0, %c0_i32 : i32
    %1 = arith.extui %0 : i1 to i32
    %c0_i32_0 = arith.constant 0 : i32
    %2 = arith.cmpi ne, %1, %c0_i32_0 : i32
    scf.if %2 {
      %cst_21 = arith.constant 0.000000e+00 : f32
      %c0_22 = arith.constant 0 : index
      %68 = memref.load %arg6[%c0_22] : memref<1xf32, #tpu.memory_space<smem>>
      memref.store %cst_21, %arg6[%c0_22] : memref<1xf32, #tpu.memory_space<smem>>
    } else {
    }
    %c0 = arith.constant 0 : index
    %c0_1 = arith.constant 0 : index
    %c0_2 = arith.constant 0 : index
    %3 = vector.load %arg1[%c0, %c0_1, %c0_2] : memref<1x16x16xf32, #tpu.memory_space<vmem>>, vector<1x16x16xf32>
    %4 = vector.shape_cast %3 : vector<1x16x16xf32> to vector<16x16xf32>
    %c0_3 = arith.constant 0 : index
    %c0_4 = arith.constant 0 : index
    %c0_5 = arith.constant 0 : index
    %5 = vector.load %arg2[%c0_3, %c0_4, %c0_5] : memref<1x16x16xf32, #tpu.memory_space<vmem>>, vector<1x16x16xf32>
    %6 = vector.shape_cast %5 : vector<1x16x16xf32> to vector<16x16xf32>
    %c0_6 = arith.constant 0 : index
    %c0_7 = arith.constant 0 : index
    %7 = vector.load %arg3[%c0_6, %c0_7] : memref<16x16xf32, #tpu.memory_space<vmem>>, vector<16x16xf32>
    %c0_8 = arith.constant 0 : index
    %c0_9 = arith.constant 0 : index
    %8 = vector.load %arg4[%c0_8, %c0_9] : memref<16x16xf32, #tpu.memory_space<vmem>>, vector<16x16xf32>
    %9 = arith.mulf %4, %4 : vector<16x16xf32>
    %10 = arith.mulf %6, %6 : vector<16x16xf32>
    %11 = arith.mulf %4, %6 : vector<16x16xf32>
    %12 = vector.shape_cast %4 : vector<16x16xf32> to vector<1x16x16xf32>
    %13 = vector.shape_cast %6 : vector<16x16xf32> to vector<1x16x16xf32>
    %14 = vector.shape_cast %9 : vector<16x16xf32> to vector<1x16x16xf32>
    %15 = vector.shape_cast %10 : vector<16x16xf32> to vector<1x16x16xf32>
    %16 = vector.shape_cast %11 : vector<16x16xf32> to vector<1x16x16xf32>
    %17 = tpu.concatenate %12, %13, %14, %15, %16 in 0 : vector<1x16x16xf32>, vector<1x16x16xf32>, vector<1x16x16xf32>, vector<1x16x16xf32>, vector<1x16x16xf32> -> vector<5x16x16xf32>
    %18 = vector.shape_cast %8 : vector<16x16xf32> to vector<1x16x16xf32>
    %19 = vector.broadcast %18 : vector<1x16x16xf32> to vector<5x16x16xf32>
    %20 = vector.shape_cast %7 : vector<16x16xf32> to vector<1x16x16xf32>
    %21 = vector.broadcast %20 : vector<1x16x16xf32> to vector<5x16x16xf32>
    "tpu.trace_start"() <{level = 10 : i32, message = "shw,swv->shv"}> : () -> ()
    %cst = arith.constant dense<0.000000e+00> : vector<5x16x16xf32>
    %22 = tpu.matmul %17, %19, %cst {dimension_numbers = #tpu.dot_dimension_numbers<[2], [1], [1], [2], [0, 0, 0, 1, 1, 2], [0], [0]>} : vector<5x16x16xf32>, vector<5x16x16xf32>, vector<5x16x16xf32> -> vector<5x16x16xf32>
    "tpu.trace_stop"() : () -> ()
    "tpu.trace_start"() <{level = 10 : i32, message = "sih,shw->siw"}> : () -> ()
    %cst_10 = arith.constant dense<0.000000e+00> : vector<5x16x16xf32>
    %23 = tpu.matmul %21, %22, %cst_10 {dimension_numbers = #tpu.dot_dimension_numbers<[2], [1], [1], [2], [0, 0, 0, 1, 1, 2], [0], [0]>} : vector<5x16x16xf32>, vector<5x16x16xf32>, vector<5x16x16xf32> -> vector<5x16x16xf32>
    "tpu.trace_stop"() : () -> ()
    %24 = vector.extract_strided_slice %23 {offsets = [0, 0, 0], sizes = [1, 16, 16], strides = [1, 1, 1]} : vector<5x16x16xf32> to vector<1x16x16xf32>
    %25 = vector.shape_cast %24 : vector<1x16x16xf32> to vector<16x16xf32>
    %26 = vector.extract_strided_slice %23 {offsets = [1, 0, 0], sizes = [1, 16, 16], strides = [1, 1, 1]} : vector<5x16x16xf32> to vector<1x16x16xf32>
    %27 = vector.shape_cast %26 : vector<1x16x16xf32> to vector<16x16xf32>
    %28 = vector.extract_strided_slice %23 {offsets = [2, 0, 0], sizes = [1, 16, 16], strides = [1, 1, 1]} : vector<5x16x16xf32> to vector<1x16x16xf32>
    %29 = vector.shape_cast %28 : vector<1x16x16xf32> to vector<16x16xf32>
    %30 = vector.extract_strided_slice %23 {offsets = [3, 0, 0], sizes = [1, 16, 16], strides = [1, 1, 1]} : vector<5x16x16xf32> to vector<1x16x16xf32>
    %31 = vector.shape_cast %30 : vector<1x16x16xf32> to vector<16x16xf32>
    %32 = vector.extract_strided_slice %23 {offsets = [4, 0, 0], sizes = [1, 16, 16], strides = [1, 1, 1]} : vector<5x16x16xf32> to vector<1x16x16xf32>
    %33 = vector.shape_cast %32 : vector<1x16x16xf32> to vector<16x16xf32>
    %34 = arith.mulf %25, %25 : vector<16x16xf32>
    %35 = arith.mulf %27, %27 : vector<16x16xf32>
    %36 = arith.mulf %25, %27 : vector<16x16xf32>
    %37 = arith.subf %29, %34 : vector<16x16xf32>
    %38 = arith.subf %31, %35 : vector<16x16xf32>
    %39 = arith.subf %33, %36 : vector<16x16xf32>
    %cst_11 = arith.constant 2.000000e+00 : f32
    %40 = vector.broadcast %cst_11 : f32 to vector<16x16xf32>
    %41 = arith.mulf %40, %36 : vector<16x16xf32>
    %cst_12 = arith.constant 9.99999974E-5 : f32
    %42 = vector.broadcast %cst_12 : f32 to vector<16x16xf32>
    %43 = arith.addf %41, %42 : vector<16x16xf32>
    %cst_13 = arith.constant 2.000000e+00 : f32
    %44 = vector.broadcast %cst_13 : f32 to vector<16x16xf32>
    %45 = arith.mulf %44, %39 : vector<16x16xf32>
    %cst_14 = arith.constant 8.99999984E-4 : f32
    %46 = vector.broadcast %cst_14 : f32 to vector<16x16xf32>
    %47 = arith.addf %45, %46 : vector<16x16xf32>
    %48 = arith.mulf %43, %47 : vector<16x16xf32>
    %49 = arith.addf %34, %35 : vector<16x16xf32>
    %cst_15 = arith.constant 9.99999974E-5 : f32
    %50 = vector.broadcast %cst_15 : f32 to vector<16x16xf32>
    %51 = arith.addf %49, %50 : vector<16x16xf32>
    %52 = arith.addf %37, %38 : vector<16x16xf32>
    %cst_16 = arith.constant 8.99999984E-4 : f32
    %53 = vector.broadcast %cst_16 : f32 to vector<16x16xf32>
    %54 = arith.addf %52, %53 : vector<16x16xf32>
    %55 = arith.mulf %51, %54 : vector<16x16xf32>
    %56 = tpu.reciprocal %55 {approx = true} : vector<16x16xf32> -> vector<16x16xf32>
    %57 = arith.mulf %48, %56 : vector<16x16xf32>
    %c0_17 = arith.constant 0 : index
    %58 = memref.load %arg6[%c0_17] : memref<1xf32, #tpu.memory_space<smem>>
    %59 = vector.shape_cast %57 : vector<16x16xf32> to vector<1x16x16xf32>
    %cst_18 = arith.constant dense<0.000000e+00> : vector<1xf32>
    %60 = vector.multi_reduction <add>, %59, %cst_18 [1, 2] : vector<1x16x16xf32> to vector<1xf32>
    %61 = vector.shape_cast %60 : vector<1xf32> to vector<1x1x1xf32>
    %62 = vector.extract %61[0, 0, 0] : f32 from vector<1x1x1xf32>
    %63 = arith.addf %58, %62 : f32
    %c0_19 = arith.constant 0 : index
    %64 = memref.load %arg6[%c0_19] : memref<1xf32, #tpu.memory_space<smem>>
    memref.store %63, %arg6[%c0_19] : memref<1xf32, #tpu.memory_space<smem>>
    %c7_i32 = arith.constant 7 : i32
    %65 = arith.cmpi eq, %arg0, %c7_i32 : i32
    %66 = arith.extui %65 : i1 to i32
    %c0_i32_20 = arith.constant 0 : i32
    %67 = arith.cmpi ne, %66, %c0_i32_20 : i32
    scf.if %67 {
      %c0_21 = arith.constant 0 : index
      %68 = memref.load %arg6[%c0_21] : memref<1xf32, #tpu.memory_space<smem>>
      %cst_22 = arith.constant 4.8828125E-4 : f32
      %69 = arith.mulf %68, %cst_22 : f32
      %cst_23 = arith.constant 1.000000e+00 : f32
      %70 = arith.subf %cst_23, %69 : f32
      %c0_24 = arith.constant 0 : index
      %71 = memref.load %arg5[%c0_24] : memref<1xf32, #tpu.memory_space<smem>>
      memref.store %70, %arg5[%c0_24] : memref<1xf32, #tpu.memory_space<smem>>
    } else {
    }
    return
  }
  func.func @transform_0(%arg0: i32) -> (i32, i32, i32) {
    %c0_i32 = arith.constant 0 : i32
    %c0_i32_0 = arith.constant 0 : i32
    %c0_i32_1 = arith.constant 0 : i32
    return %arg0, %c0_i32, %c0_i32_0 : i32, i32, i32
  }
  func.func @transform_1(%arg0: i32) -> (i32, i32, i32) {
    %c0_i32 = arith.constant 0 : i32
    %c0_i32_0 = arith.constant 0 : i32
    %c0_i32_1 = arith.constant 0 : i32
    return %arg0, %c0_i32, %c0_i32_0 : i32, i32, i32
  }
  func.func @transform_2(%arg0: i32) -> (i32, i32) {
    %c0_i32 = arith.constant 0 : i32
    %c0_i32_0 = arith.constant 0 : i32
    %c0_i32_1 = arith.constant 0 : i32
    return %c0_i32, %c0_i32_0 : i32, i32
  }
  func.func @transform_3(%arg0: i32) -> (i32, i32) {
    %c0_i32 = arith.constant 0 : i32
    %c0_i32_0 = arith.constant 0 : i32
    %c0_i32_1 = arith.constant 0 : i32
    return %c0_i32, %c0_i32_0 : i32, i32
  }
  func.func @transform_4(%arg0: i32) -> i32 {
    %c0_i32 = arith.constant 0 : i32
    %c0_i32_0 = arith.constant 0 : i32
    return %c0_i32 : i32
  }
}

</mosaic_0001>

<bundles_post_ra>
// kernel: tpu_custom_call.1
= control target key start
LH: loop header
LB: loop body
LE: loop exit
PB: predicated region body
PF: predicated region fallthrough
CT: control target
= control target key end

     0   :  { %9 = vsyncpa [#allocation4], 0  ;;  %s1904_s0 = inlined_call_operand.hbm [shape: f32[8,16,16], index: 0, kind: input, shape index: {}]   ;;  %s1905_s1 = inlined_call_operand.hbm [shape: f32[8,16,16], index: 1, kind: input, shape index: {}]   ;;  %s1906_s2 = inlined_call_operand.hbm [shape: f32[16,16], index: 2, kind: input, shape index: {}]   ;;  %s1907_s3 = inlined_call_operand.hbm [shape: f32[16,16], index: 3, kind: input, shape index: {}]   ;;  %s1908_s4 = inlined_call_operand.hbm [shape: f32[1], index: 4, kind: output, shape index: {}]  }
   0x1   :  { %11 = vsyncpa [#allocation4 + $0x1], 0 }
   0x2   :  { %12 = vsyncpa [#allocation7], 0 }
   0x3   :  { %14 = vsyncpa [#allocation7 + $0x1], 0 }
   0x4   :  { %15 = vsyncpa [#allocation10], 0 }
   0x5   :  { %16 = vsyncpa [#allocation5], 0  ;;  %s1683_s15 = smov 0   ;;  %s1685_s16 = smov 0  }
   0x6   :  { %s1687_s17 = smov 0   ;;  %s1689_s18 = smov 0  }
   0x7 LB: > { %s1702_s19 = sadd.s32 4294967295, %s1648_s18   ;;  %p42_p0 = scmp.ne.s32.totalorder %s1640_s16, %s1636_s15  ;;  %s1648_s18 = sphi %s1689_s18, %s1924_s18   ;;  %s1644_s17 = sphi %s1687_s17, %s1923_s17   ;;  %s1640_s16 = sphi %s1685_s16, %s1922_s16   ;;  %s1636_s15 = sphi %s1683_s15, %s1921_s15  }
   0x8   : > { %p1909_p1 = scmp.eq.s32.totalorder %s1702_s19, 0  ;;  %p1240_p2 = scmp.ge.s32.totalorder %s1648_s18, 1 }
   0x9   : > { %p142_p3 = scmp.lt.s32.totalorder %s1648_s18, 9  ;;  %s1650_s22 = smov [#allocation8]  }
   0xa   : > { %p1710_p4 = por %p1909_p1, %p42_p0  ;;  %s154_s23 = sshll.u32 %s1650_s22, 4  ;;  %s155_s23 = int_to_ptr.vmem [resolvable:$true] %s154_s23 }
   0xb   : > { %p1714_p5 = pnand %p1240_p2, %p142_p3  ;;  %s1651_s25 = smov [#allocation9]  }
   0xc   : > { %s1911_s20 = scalar_select %p1710_p4, 1, 0 }
   0xd   : > { %p1415_p6 = pneg %p1714_p5  ;;  %s167_s26 = sshll.u32 %s1651_s25, 4  ;;  %s168_s26 = int_to_ptr.vmem [resolvable:$true] %s167_s26 }
   0xe   : > { %s1491_s27 = scalar_lea.vmem %s155_s23, 256  ;;  %p1499_p12 = scmp.lt.s32.totalorder %s155_s23, %s155_s23 }
   0xf   : > { %p1722_p7 = pnand %p1415_p6, %p1909_p1  ;;  %p1492_p9 = scmp.ne.s32.totalorder %s155_s23, %s1491_s27 }
  0x10   : > { %p1500_p13 = scmp.lt.s32.totalorder %s1491_s27, %s1491_s27 }
  0x11   : > { %p1482_p8 = pneg %p1722_p7 }
  0x12   : > { %p1501_p0 = por %p1500_p13, %p1499_p12 }
  0x13   : > { %p1494_p10 = pnand %p1492_p9, %p1482_p8 }
  0x15   : > { %p1495_p11 = pneg %p1494_p10 }
  0x17   : > { %p1502_p2 = pnand %p1501_p0, %p1495_p11 }
  0x19   : > { %1505 = shalt.err (!%p1502_p2)
}
  0x1a   : > { %s1652_s28 = smov 128   ;;  %s1653_s29 = smov 8  }
  0x1b   : > { %1418 = dma.hbm_to_vmem [thread:$0]  (!%p1722_p7), %s1906_s2, 256, %s155_s23, [#allocation7], %s1652_s28, %s1652_s28, %s1653_s29  }
  0x1c   : > { %s1517_s6 = scalar_lea.vmem %s168_s26, 256  ;;  %p1525_p10 = scmp.lt.s32.totalorder %s168_s26, %s168_s26 }
  0x1d   : > { %p1518_p3 = scmp.ne.s32.totalorder %s168_s26, %s1517_s6  ;;  %p1526_p11 = scmp.lt.s32.totalorder %s1517_s6, %s1517_s6 }
  0x1f   : > { %p1520_p6 = pnand %p1518_p3, %p1482_p8  ;;  %p1527_p12 = por %p1526_p11, %p1525_p10 }
  0x21   : > { %p1521_p9 = pneg %p1520_p6 }
  0x23   : > { %p1528_p13 = pnand %p1527_p12, %p1521_p9 }
  0x25   : > { %1531 = shalt.err (!%p1528_p13)
}
  0x26   : > { %1421 = dma.hbm_to_vmem [thread:$0]  (!%p1722_p7), %s1907_s3, 256, %s168_s26, [#allocation10], %s1652_s28, %s1652_s28, %s1653_s29  }
  0x27   : > { %s1751_s9 = sadd.s32 1, %s1648_s18   ;;  %s29_s10 = sadd.s32 1, %s1644_s17 }
  0x28   : > { %s26_s11 = ssub.s32 %s1648_s18, %s1751_s9  ;;  %p36_p8 = scmp.ne.s32.totalorder %s1644_s17, %s1640_s16 }
  0x29   : > { %p27_p0 = scmp.eq.s32.totalorder %s26_s11, 0  ;;  %p37_p2 = scmp.eq.s32.totalorder %s1648_s18, 0 }
  0x2a   : > { %p1431_p3 = scmp.lt.s32.totalorder %s1648_s18, 8  ;;  %s181_s12 = sand.u32 1, %s1644_s17  }
  0x2b   : > { %s1762_s13 = scalar_select %p27_p0, %s1644_s17, %s29_s10  }
  0x2c   : > { %p38_p6 = por %p37_p2, %p36_p8  ;;  %s1764_s14 = sshll.u32 %s181_s12, 4 }
  0x2d   : > { %s1281_s15 = sshll.u32 %s1648_s18, 8  ;;  %s185_s25 = scalar_lea.vmem [#allocation3], %s1764_s14 }
  0x2e   : > { %s1770_s24 = scalar_lea.hbm %s1904_s0, %s1281_s15  ;;  %s192_s26 = sshll.u32 %s185_s25, 4  ;;  %s1777_s26 = int_to_ptr.vmem [resolvable:$true] %s192_s26 }
  0x2f   : > { %p1773_p7 = pnand %p1431_p3, %p38_p6  ;;  %s1782_s6 = scalar_lea.hbm %s1905_s1, %s1281_s15 }
  0x30   : > { %s1784_s7 = scalar_lea.sflag [#allocation4], %s181_s12  ;;  %s1532_s8 = scalar_lea.hbm %s1770_s24, 256 }
  0x31   : > { %p1533_p9 = scmp.ne.s32.totalorder %s1770_s24, %s1532_s8  ;;  %p1534_p10 = pneg %p1773_p7 }
  0x32   : > { %s1537_s22 = scalar_lea.hbm %s1904_s0, 2048  ;;  %p1538_p13 = scmp.lt.s32.totalorder %s1770_s24, %s1904_s0 }
  0x33   : > { %p1535_p11 = pnand %p1534_p10, %p1533_p9  ;;  %p1539_p8 = scmp.lt.s32.totalorder %s1537_s22, %s1532_s8 }
  0x35   : > { %p1536_p12 = pneg %p1535_p11  ;;  %p1540_p0 = por %p1539_p8, %p1538_p13 }
  0x37   : > { %p1541_p2 = pnand %p1540_p0, %p1536_p12 }
  0x39   : > { %1544 = shalt.err (!%p1541_p2)
}
  0x3a   : > { %s1545_s12 = scalar_lea.vmem %s1777_s26, 256  ;;  %s1654_s15 = smov [#allocation3]  }
  0x3b   : > { %p1546_p3 = scmp.ne.s32.totalorder %s1777_s26, %s1545_s12  ;;  %s1550_s30 = sshll.u32 %s1654_s15, 4  ;;  %s1551_s30 = int_to_ptr.vmem [resolvable:$false] %s1550_s30 }
  0x3c   : > { %s1552_s5 = scalar_lea.vmem %s1551_s30, 512  ;;  %p1553_p11 = scmp.lt.s32.totalorder %s1777_s26, %s1551_s30 }
  0x3d   : > { %p1548_p6 = pnand %p1546_p3, %p1534_p10  ;;  %p1554_p1 = scmp.lt.s32.totalorder %s1552_s5, %s1545_s12 }
  0x3f   : > { %p1549_p9 = pneg %p1548_p6  ;;  %p1555_p4 = por %p1554_p1, %p1553_p11 }
  0x41   : > { %p1556_p13 = pnand %p1555_p4, %p1549_p9 }
  0x43   : > { %1559 = shalt.err (!%p1556_p13)
}
  0x44   : > { %1425 = dma.hbm_to_vmem [thread:$0]  (!%p1773_p7), %s1770_s24, 256, %s1777_s26, %s1784_s7, %s1652_s28, %s1652_s28, %s1653_s29  }
  0x45   : > { %s206_s8 = scalar_lea.vmem [#allocation6], %s1764_s14  ;;  %s202_s11 = sand.u32 1, %s1648_s18  }
  0x46   : > { %s213_s10 = sshll.u32 %s206_s8, 4  ;;  %s203_s22 = scalar_lea.sflag [#allocation7], %s202_s11  ;;  %s1816_s10 = int_to_ptr.vmem [resolvable:$true] %s213_s10 }
  0x47   : > { %s1560_s23 = scalar_lea.hbm %s1782_s6, 256  ;;  %s1565_s15 = scalar_lea.hbm %s1905_s1, 2048 }
  0x48   : > { %p1561_p1 = scmp.ne.s32.totalorder %s1782_s6, %s1560_s23  ;;  %p1566_p8 = scmp.lt.s32.totalorder %s1782_s6, %s1905_s1 }
  0x49   : > { %p1567_p0 = scmp.lt.s32.totalorder %s1565_s15, %s1560_s23 }
  0x4a   : > { %p1563_p4 = pnand %p1561_p1, %p1534_p10 }
  0x4b   : > { %p1568_p2 = por %p1567_p0, %p1566_p8 }
  0x4c   : > { %p1564_p12 = pneg %p1563_p4 }
  0x4e   : > { %p1569_p3 = pnand %p1568_p2, %p1564_p12 }
  0x50   : > { %1572 = shalt.err (!%p1569_p3)
}
  0x51   : > { %s1573_s18 = scalar_lea.vmem %s1816_s10, 256  ;;  %s1655_s14 = smov [#allocation6]  }
  0x52   : > { %p1574_p6 = scmp.ne.s32.totalorder %s1816_s10, %s1573_s18  ;;  %s1578_s24 = sshll.u32 %s1655_s14, 4  ;;  %s1579_s24 = int_to_ptr.vmem [resolvable:$false] %s1578_s24 }
  0x53   : > { %s1580_s26 = scalar_lea.vmem %s1579_s24, 512  ;;  %p1581_p13 = scmp.lt.s32.totalorder %s1816_s10, %s1579_s24 }
  0x54   : > { %p1576_p9 = pnand %p1574_p6, %p1534_p10  ;;  %p1582_p1 = scmp.lt.s32.totalorder %s1580_s26, %s1573_s18 }
  0x56   : > { %p1577_p11 = pneg %p1576_p9  ;;  %p1583_p4 = por %p1582_p1, %p1581_p13 }
  0x58   : > { %p1584_p8 = pnand %p1583_p4, %p1577_p11 }
  0x5a   : > { %1587 = shalt.err (!%p1584_p8)
}
  0x5b   : > { %1428 = dma.hbm_to_vmem [thread:$0]  (!%p1773_p7), %s1782_s6, 256, %s1816_s10, %s203_s22, %s1652_s28, %s1652_s28, %s1653_s29  }
  0x5c   : > { %225 = sbr.rel (%p1714_p5) target bundleno = 749 (0x2ed), region = 36  ;;  %s227_s7 = sand.u32 (!%p1714_p5), 1, %s1640_s16  }
  0x5d   : > { %s1251_s8 = sshll.u32 (!%p1714_p5), %s227_s7, 4  ;;  %s228_s11 = scalar_lea.sflag (!%p1714_p5), [#allocation4], %s227_s7 }
  0x5e   : > { %s231_s23 = scalar_lea.vmem (!%p1714_p5), [#allocation3], %s1251_s8  ;;  %p1915_p10 = scmp.ne.s32.totalorder (!%p1714_p5), %s1911_s20, 0 }
  0x61   : > { %1615 = dma.done.wait (%p1915_p10), %s228_s11, 256  }
  0x62   : > { %1617 = vsyncadd (%p1915_p10), %s228_s11, 4294967040  ;;  %s236_s27 = sand.u32 1, %s1702_s19   ;;  %s240_s12 = scalar_lea.vmem [#allocation6], %s1251_s8 }
  0x63   : > { %s237_s25 = scalar_lea.sflag [#allocation7], %s236_s27 }
  0x64   : > { %1619 = dma.done.wait (%p1915_p10), %s237_s25, 256  }
  0x65   : > { %1621 = vsyncadd (%p1915_p10), %s237_s25, 4294967040  ;;  %p1916_p5 = scmp.eq.s32.totalorder %s1702_s19, 0 }
  0x67   : > { %1623 = dma.done.wait (%p1916_p5), [#allocation7], 256   ;;  %p1917_p7 = pmov %p1916_p5 }
  0x68   : > { %p1918_p12 = pmov %p1916_p5 }
  0x69   : > { %1625 = vsyncadd (%p1917_p7), [#allocation7], 4294967040 }
  0x6a   : > { %1627 = dma.done.wait (%p1918_p12), [#allocation10], 256   ;;  %p1919_p0 = pmov %p1916_p5 }
  0x6b   : > { %v286_v0 = vld [vmem:[#allocation9 + $0x8] sm:$0xff]  ;;  %v285_v1 = vld [vmem:[#allocation9] sm:$0xff]  ;;  %vm293_vm0 = vcmask 130048   ;;  %v283_v12 = vld [vmem:[#allocation8] sm:$0xff]  ;;  %s1656_s20 = smov 0.0   ;;  %p1435_p3 = scmp.eq.s32.totalorder %s1702_s19, 7 }
  0x6c   : > { %1629 = vsyncadd (%p1919_p0), [#allocation10], 4294967040  ;;  %1323 = vmatprep.subr.mxu0 %v286_v0  ;;  %1330 = vmatprep.subr.mxu1 %v286_v0  ;;  %v279_v2 = vld [vmem:[%s231_s23] sm:$0xff]  ;;  %v280_v4 = vld [vmem:[%s231_s23 + $0x8] sm:$0xff]  ;;  %p1920_p2 = pmov %p1919_p0  ;;  %s1657_s22 = smov [#allocation11]  }
  0x6d   : > { %1324 = vmatpush3.msra.mxu0 %v286_v0  ;;  %1331 = vmatpush3.msra.mxu1 %v286_v0  ;;  %v281_v3 = vld [vmem:[%s240_s12] sm:$0xff]  ;;  %v282_v5 = vld [vmem:[%s240_s12 + $0x8] sm:$0xff]  ;;  %v287_v6 = vmul.f32 %v279_v2, %v279_v2  ;;  %v288_v8 = vmul.f32 %v280_v4, %v280_v4 }
  0x6e   : > { %1325 = vmatprep.subr.mxu0 %v285_v1  ;;  %1332 = vmatprep.subr.mxu1 %v285_v1  ;;  %v289_v7 = vmul.f32 %v281_v3, %v281_v3  ;;  %v290_v9 = vmul.f32 %v282_v5, %v282_v5  ;;  %v291_v10 = vmul.f32 %v281_v3, %v279_v2  ;;  %v284_v17 = vld [vmem:[#allocation8 + $0x8] sm:$0xff]  ;;  %1408 = sst [smem:[#allocation2]] (%p1920_p2), %s1656_s20 }
  0x6f   : > { %1326 = vmatpush3.msra.mxu0 %v285_v1  ;;  %1327 = vmatprep.mubr.msk.f32.mxu0 %vm293_vm0, %v279_v2  ;;  %v292_v11 = vmul.f32 %v282_v5, %v280_v4  ;;  %s1116_s21 = sld [smem:[#allocation2]] }
  0x70   : > { %1333 = vmatpush3.msra.mxu1 %v285_v1  ;;  %1334 = vmatprep.mubr.msk.f32.mxu1 %vm293_vm0, %v281_v3 }
  0x71   : > { %1328 = vmatmul.mubr.msk.f32.vlgmr.msra.gmra.mxu0 %vm293_vm0, %v280_v4  ;;  %1335 = vmatmul.mubr.msk.f32.vlgmr.msra.gmra.mxu1 %vm293_vm0, %v282_v5 }
  0x72   : > { %1337 = vmatprep.subr.mxu0 %v286_v0  ;;  %1344 = vmatprep.subr.mxu1 %v286_v0 }
  0x73   : > { %1338 = vmatpush3.msra.mxu0 %v286_v0  ;;  %1345 = vmatpush3.msra.mxu1 %v286_v0 }
  0x74   : > { %1339 = vmatprep.subr.mxu0 %v285_v1  ;;  %1346 = vmatprep.subr.mxu1 %v285_v1 }
  0x75   : > { %1340 = vmatpush3.msra.mxu0 %v285_v1  ;;  %1341 = vmatprep.mubr.msk.f32.mxu0 %vm293_vm0, %v287_v6 }
  0x76   : > { %1347 = vmatpush3.msra.mxu1 %v285_v1  ;;  %1348 = vmatprep.mubr.msk.f32.mxu1 %vm293_vm0, %v289_v7 }
  0x77   : > { %1342 = vmatmul.mubr.msk.f32.vlgmr.msra.gmra.mxu0 %vm293_vm0, %v288_v8  ;;  %1349 = vmatmul.mubr.msk.f32.vlgmr.msra.gmra.mxu1 %vm293_vm0, %v290_v9 }
  0x78   : > { %1351 = vmatprep.subr.mxu0 %v286_v0  ;;  %1355 = vmatprep.mubr.msk.f32.mxu0 %vm293_vm0, %v291_v10 }
  0x79   : > { %1352 = vmatpush3.msra.mxu0 %v286_v0  ;;  %1362 = vmatprep.mubr.msk.f32.mxu1 %vm293_vm0, %v283_v12 }
  0x7a   : > { %1353 = vmatprep.subr.mxu0 %v285_v1 }
  0x7b   : > { %1354 = vmatpush3.msra.mxu0 %v285_v1 }
  0x7c   : > { %1356 = vmatmul.mubr.msk.f32.vlgmr.msra.gmra.mxu0 %vm293_vm0, %v292_v11 }
  0x7d   : > { %1369 = vmatprep.mubr.msk.f32.mxu0 %vm293_vm0, %v283_v12 }
 0x131   : > { %v1329_v13 = vpop.f32.mrf.mxu0  ;;  %v1336_v14 = vpop.f32.mrf.mxu1 }
 0x132   : > { %1358 = vmatprep.subr.mxu1 %v1329_v13  ;;  %1365 = vmatprep.subr.mxu0 %v1336_v14 }
 0x133   : > { %v366_v15 = vpop.f32.mrf.mxu0  ;;  %v447_v16 = vpop.f32.mrf.mxu1  ;;  %1359 = vmatpush3.msra.mxu1 %v1329_v13  ;;  %1366 = vmatpush3.msra.mxu0 %v1336_v14 }
 0x134   : > { %1360 = vmatprep.subr.mxu1 %v366_v15  ;;  %1367 = vmatprep.subr.mxu0 %v447_v16 }
 0x135   : > { %1361 = vmatpush3.msra.mxu1 %v366_v15  ;;  %1368 = vmatpush3.msra.mxu0 %v447_v16 }
 0x136   : > { %1363 = vmatmul.mubr.msk.f32.vlgmr.msra.gmra.mxu1 %vm293_vm0, %v284_v17  ;;  %1370 = vmatmul.mubr.msk.f32.vlgmr.msra.gmra.mxu0 %vm293_vm0, %v284_v17 }
 0x137   : > { %v1343_v18 = vpop.f32.mrf.mxu0  ;;  %v1350_v19 = vpop.f32.mrf.mxu1  ;;  %1376 = vmatprep.mubr.msk.f32.mxu1 %vm293_vm0, %v283_v12  ;;  %1383 = vmatprep.mubr.msk.f32.mxu0 %vm293_vm0, %v283_v12 }
 0x138   : > { %1372 = vmatprep.subr.mxu1 %v1343_v18  ;;  %1379 = vmatprep.subr.mxu0 %v1350_v19 }
 0x139   : > { %v528_v20 = vpop.f32.mrf.mxu0  ;;  %v609_v21 = vpop.f32.mrf.mxu1  ;;  %1373 = vmatpush3.msra.mxu1 %v1343_v18  ;;  %1380 = vmatpush3.msra.mxu0 %v1350_v19 }
 0x13a   : > { %1374 = vmatprep.subr.mxu1 %v528_v20  ;;  %1381 = vmatprep.subr.mxu0 %v609_v21 }
 0x13b   : > { %1375 = vmatpush3.msra.mxu1 %v528_v20  ;;  %1382 = vmatpush3.msra.mxu0 %v609_v21 }
 0x13c   : > { %v1357_v22 = vpop.f32.mrf.mxu0  ;;  %1377 = vmatmul.mubr.msk.f32.vlgmr.msra.gmra.mxu1 %vm293_vm0, %v284_v17  ;;  %1384 = vmatmul.mubr.msk.f32.vlgmr.msra.gmra.mxu0 %vm293_vm0, %v284_v17 }
 0x13d   : > { %1386 = vmatprep.subr.mxu1 %v1357_v22  ;;  %1390 = vmatprep.mubr.msk.f32.mxu1 %vm293_vm0, %v283_v12 }
 0x13e   : > { %v690_v23 = vpop.f32.mrf.mxu0  ;;  %1387 = vmatpush3.msra.mxu1 %v1357_v22 }
 0x13f   : > { %1388 = vmatprep.subr.mxu1 %v690_v23 }
 0x140   : > { %1389 = vmatpush3.msra.mxu1 %v690_v23 }
 0x141   : > { %1391 = vmatmul.mubr.msk.f32.vlgmr.msra.gmra.mxu1 %vm293_vm0, %v284_v17 }
 0x1f6   : > { %v1364_v24 = vpop.f32.mrf.mxu1  ;;  %v1371_v25 = vpop.f32.mrf.mxu0 }
 0x1f7   : > { %v1081_v28 = vmul.f32 %v1364_v24, %v1364_v24  ;;  %v1083_v29 = vmul.f32 %v1371_v25, %v1371_v25  ;;  %v1085_v47 = vmul.f32 %v1371_v25, %v1364_v24 }
 0x1f8   : > { %v771_v26 = vpop.f32.mrf.mxu1  ;;  %v846_v27 = vpop.f32.mrf.mxu0 }
 0x1f9   : > { %v1080_v30 = vmul.f32 %v771_v26, %v771_v26  ;;  %v1082_v31 = vmul.f32 %v846_v27, %v846_v27  ;;  %v1103_v34 = vadd.f32 %v1083_v29, %v1081_v28  ;;  %v1084_v52 = vmul.f32 %v846_v27, %v771_v26 }
 0x1fa   : > { %v1093_v57 = vmul.f32 2.0, %v1085_v47 }
 0x1fb   : > { %v1102_v39 = vadd.f32 %v1082_v31, %v1080_v30  ;;  %v1105_v43 = vadd.f32 0.0001, %v1103_v34  ;;  %v1092_v59 = vmul.f32 2.0, %v1084_v52 }
 0x1fc   : > { %v1378_v32 = vpop.f32.mrf.mxu1  ;;  %v1385_v33 = vpop.f32.mrf.mxu0  ;;  %v1095_v61 = vadd.f32 0.0001, %v1093_v57 }
 0x1fd   : > { %v1087_v35 = vsub.f32 %v1378_v32, %v1081_v28  ;;  %v1089_v36 = vsub.f32 %v1385_v33, %v1083_v29  ;;  %v1104_v48 = vadd.f32 0.0001, %v1102_v39  ;;  %v1094_v63 = vadd.f32 0.0001, %v1092_v59 }
 0x1fe   : > { %v921_v37 = vpop.f32.mrf.mxu1  ;;  %v996_v38 = vpop.f32.mrf.mxu0 }
 0x1ff   : > { %v1107_v40 = vadd.f32 %v1089_v36, %v1087_v35  ;;  %v1086_v41 = vsub.f32 %v921_v37, %v1080_v30  ;;  %v1088_v42 = vsub.f32 %v996_v38, %v1082_v31 }
 0x201   : > { %v1109_v44 = vadd.f32 0.0009, %v1107_v40  ;;  %v1106_v45 = vadd.f32 %v1088_v42, %v1086_v41  ;;  %v1392_v46 = vpop.f32.mrf.mxu1 }
 0x202   : > { %v1091_v54 = vsub.f32 %v1392_v46, %v1085_v47 }
 0x203   : > { %v1111_v49 = vmul.f32 %v1109_v44, %v1105_v43  ;;  %v1108_v50 = vadd.f32 0.0009, %v1106_v45  ;;  %v1071_v51 = vpop.f32.mrf.mxu1 }
 0x204   : > { %v1090_v55 = vsub.f32 %v1071_v51, %v1084_v52  ;;  %v1097_v56 = vmul.f32 2.0, %v1091_v54 }
 0x205   : > { %1476 = vrcp.f32 %v1111_v49  ;;  %v1110_v53 = vmul.f32 %v1108_v50, %v1104_v48 }
 0x206   : > { %v1096_v58 = vmul.f32 2.0, %v1090_v55  ;;  %v1099_v60 = vadd.f32 0.0009, %v1097_v56 }
 0x207   : > { %1478 = vrcp.f32 %v1110_v53 }
 0x208   : > { %v1098_v62 = vadd.f32 0.0009, %v1096_v58  ;;  %v1101_v0 = vmul.f32 %v1099_v60, %v1095_v61 }
 0x20a   : > { %v1100_v2 = vmul.f32 %v1098_v62, %v1094_v63 }
 0x212   : > { %v1477_v1 = vpop.eup %1476 }
 0x213   : > { %v1115_v3 = vmul.f32 %v1477_v1, %v1101_v0 }
 0x214   : > { %v1479_v4 = vpop.eup %1478 }
 0x215   : > { %v1114_v5 = vmul.f32 %v1479_v4, %v1100_v2  ;;  %v1118_v7 = vsel %vm293_vm0, %v1115_v3, 0.0 }
 0x217   : > { %v1117_v6 = vsel %vm293_vm0, %v1114_v5, 0.0 }
 0x218   : > { %v1119_v8 = vadd.f32 %v1118_v7, %v1117_v6 }
 0x21a   : > { %1120 = vadd.xlane.f32.xlu0 %v1119_v8 }
 0x2a3   : > { %v1121_v9 = vpop.xlane.xlu0 %1120 }
 0x2a4   : > { %v1122_v10 = vrot.slane %v1121_v9, 4 }
 0x2a6   : > { %v1123_v11 = vadd.f32 %v1122_v10, %v1121_v9 }
 0x2a8   : > { %v1124_v12 = vrot.slane %v1123_v11, 2 }
 0x2aa   : > { %v1125_v13 = vadd.f32 %v1124_v12, %v1123_v11 }
 0x2ac   : > { %v1126_v14 = vrot.slane %v1125_v13, 1 }
 0x2ae   : > { %v1127_v15 = vadd.f32 %v1126_v14, %v1125_v13 }
 0x2b0   : > { %1393 = vpush %v1127_v15 }
 0x2e1   : > { %s1394_s28 = spop %1393 }
 0x2e2   : > { %s1129_s29 = sadd.f32 %s1394_s28, %s1116_s21 }
 0x2e4   : > { %1131 = sst [smem:[#allocation2]] %s1129_s29  ;;  %s1137_s6 = smul.f32 0.00048828125, %s1129_s29 }
 0x2e6   : > { %s1138_s10 = ssub.f32 1.0, %s1137_s6 }
 0x2e8   : > { %1410 = sst [smem:[#allocation11]] (%p1435_p3), %s1138_s10 }
 0x2e9   : > { %1412 = dma.smem_to_hbm (%p1435_p3), %s1657_s22, 16, %s1908_s4, [#allocation5]  }
 0x2ea   : > { %1631 = dma.done.wait (%p1435_p3), [#allocation5], 16  }
 0x2eb   : > { %1633 = vsyncadd (%p1435_p3), [#allocation5], 4294967280 }
 0x2ec   : > { %1154 = sfence }
 0x2ed PF: > { %p19_p6 = scmp.ge.s32.totalorder %s1751_s9, 10   ;;  %s1921_s15 = smov %s1640_s16 }
 0x2ee   : > { %s1922_s16 = smov %s1644_s17  ;;  %s1923_s17 = smov %s1762_s13 }
 0x2ef   : > { %s1924_s18 = smov %s1751_s9  ;;  %21 = sbr.rel (!%p19_p6) target bundleno = 7 (0x7), region = 105 }
 0x2f4   :  { %1160 = vsyncpa [#allocation4], 1 }
 0x2f5   :  { %1162 = vsyncpa [#allocation4 + $0x1], 1 }
 0x2f6   :  { %1163 = vsyncpa [#allocation7], 1 }
 0x2f7   :  { %1165 = vsyncpa [#allocation7 + $0x1], 1 }
 0x2f8   :  { %1166 = vsyncpa [#allocation10], 1 }
 0x2f9   :  { %1167 = vsyncpa [#allocation5], 1 }
 0x2fa   :  { %1169 = vsyncpa [#allocation5 + $0x1], 1 }

</bundles_post_ra>
